<compile_context>
chip_gen: v6e
topology: v6e:2x2x1
jax: 0.10.0
libtpu: 0.0.40
codegen_flags: <defaults>
</compile_context>

<pallas_src>
import functools

import jax
import jax.numpy as jnp
from jax import lax
from jax.experimental import pallas as pl
from jax.experimental.pallas import tpu as pltpu


def _round_up(x: int, m: int) -> int:
    return (x + m - 1) // m * m


def _block_budget_bytes() -> int:
    """Per-block byte budget; 2 in + 2 out double-buffered blocks must fit VMEM."""
    try:
        vmem = int(pltpu.get_tpu_info().vmem_capacity_bytes)
    except Exception:
        vmem = 64 * 1024 * 1024  # conservative: v7x per-TC VMEM
    return max(2 * 1024 * 1024, min(8 * 1024 * 1024, vmem // 16))


def _pick_t_blk(ml128: int, max_cols: int) -> int:
    """Largest multiple of 128 <= max_cols that divides ml128 (full last block)."""
    cap = max(128, min(ml128, (max_cols // 128) * 128))
    if cap >= ml128:
        return ml128
    units = ml128 // 128
    cap_units = cap // 128
    for k in range(cap_units, 0, -1):
        if units % k == 0:
            return k * 128
    return cap


def _pad_trunc_kernel(x_ref, o_ref, *, length, t_blk, needs_mask):
    if not needs_mask:
        # Truncate / equal-length path: straight streaming tile copy.
        o_ref[...] = x_ref[...]
        return

    j = pl.program_id(1)
    n_full = length // t_blk          # column blocks fully inside the input
    rem = length % t_blk              # valid columns in the boundary block (0 => none)
    zero_start = n_full + (1 if rem else 0)

    @pl.when(j < n_full)
    def _copy():
        o_ref[...] = x_ref[...]

    if rem:
        @pl.when(j == n_full)
        def _boundary():
            # Mask sanitizes the partially-OOB lanes of the edge input block.
            x = x_ref[...]
            cols = lax.broadcasted_iota(jnp.int32, x.shape, dimension=1)
            o_ref[...] = jnp.where(cols < rem, x, jnp.zeros_like(x))

    @pl.when(j >= zero_start)
    def _zero():
        # Pure zero-fill: no dependency on the input tile (no vld, no DMA data dep).
        o_ref[...] = jnp.zeros_like(o_ref)


def pad_trunc_seq(x: jax.Array, max_len: int = 96000) -> jax.Array:
    """Pad with zeros or truncate the last axis of `x` to exactly `max_len` samples."""
    *lead, length = x.shape
    rows = 1
    for d in lead:
        rows *= d

    # Degenerate shapes: no kernel needed.
    if max_len == 0 or rows == 0 or length == 0:
        return jnp.zeros((*lead, max_len), x.dtype)

    x2d = x.reshape(rows, length)
    elem = x2d.dtype.itemsize
    sub = {4: 8, 2: 16, 1: 32}.get(elem, 8)       # packed-sublane multiple per dtype
    rows_padded = _round_up(rows, sub)
    ml128 = _round_up(max_len, 128)

    budget = _block_budget_bytes()
    if rows_padded * ml128 * elem <= budget:
        # Whole (padded) output fits one block: one DMA in, one out per grid point.
        r_blk, t_blk = rows_padded, ml128
    else:
        # Keep lanes reasonably wide, give the rest of the budget to rows, then grow
        # the lane block to fill the budget with a divisor of the padded time axis.
        min_t = min(ml128, 1024)
        r_blk = min(rows_padded, max(sub, (budget // (min_t * elem)) // sub * sub))
        t_blk = _pick_t_blk(ml128, budget // (r_blk * elem))

    # v7x megacore: prefer >= 2 blocks along a parallel axis when the whole array would
    # otherwise be a single block and there are enough rows to split.
    if (pl.cdiv(rows, r_blk) * pl.cdiv(max_len, t_blk)) < 2 and rows_padded >= 2 * sub:
        r_blk = _round_up(pl.cdiv(rows_padded, 2), sub)

    grid = (pl.cdiv(rows, r_blk), pl.cdiv(max_len, t_blk))
    needs_mask = max_len > length

    # Zero-fill tiles clamp their input block index to the last valid block; with the
    # column axis innermost, consecutive revisits of the same index elide the DMA and
    # the kernel never reads that buffer in the zero region anyway.
    last_in_blk = max(pl.cdiv(length, t_blk) - 1, 0)

    in_spec = pl.BlockSpec((r_blk, t_blk),
                           lambda i, j: (i, jnp.minimum(j, last_in_blk)))
    out_spec = pl.BlockSpec((r_blk, t_blk), lambda i, j: (i, j))

    copy_cols = min(length, max_len)
    cost = pl.CostEstimate(
        flops=0,
        transcendentals=0,
        bytes_accessed=int(rows * (copy_cols + max_len) * elem),
    )

    block_bytes = r_blk * t_blk * elem
    vmem_limit = int(max(32 * 1024 * 1024, 4 * block_bytes + 8 * 1024 * 1024))

    out2d = pl.pallas_call(
        functools.partial(_pad_trunc_kernel, length=length, t_blk=t_blk,
                          needs_mask=needs_mask),
        out_shape=jax.ShapeDtypeStruct((rows, max_len), x2d.dtype),
        grid=grid,
        in_specs=[in_spec],
        out_specs=out_spec,
        compiler_params=pltpu.CompilerParams(
            dimension_semantics=("parallel", "parallel"),
            vmem_limit_bytes=vmem_limit,
        ),
        cost_estimate=cost,
    )(x2d)

    return out2d.reshape(*lead, max_len)


if __name__ == "__main__":
    key = jax.random.PRNGKey(0)
    k_pad, k_trunc, k_eq, k_bf16 = jax.random.split(key, 4)

    max_len = 512  # small stand-in for the module's default 96000

    # Sequence data (batch, time), as the module expects.
    x_pad = jax.random.normal(k_pad, (2, 300), dtype=jnp.float32)      # length < max_len -> zero-pad
    x_trunc = jax.random.normal(k_trunc, (2, 700), dtype=jnp.float32)  # length > max_len -> truncate
    x_eq = jax.random.normal(k_eq, (2, 512), dtype=jnp.float32)        # length == max_len -> identity
    x_bf16 = jax.random.normal(k_bf16, (4, 200), dtype=jnp.bfloat16)   # packed-dtype pad path

    out_pad = jax.block_until_ready(pad_trunc_seq(x_pad, max_len))
    out_trunc = jax.block_until_ready(pad_trunc_seq(x_trunc, max_len))
    out_eq = jax.block_until_ready(pad_trunc_seq(x_eq, max_len))
    out_bf16 = jax.block_until_ready(pad_trunc_seq(x_bf16, max_len))

    def ref(x, m):
        L = x.shape[-1]
        if L < m:
            pad = jnp.zeros(x.shape[:-1] + (m - L,), x.dtype)
            return jnp.concatenate([x, pad], axis=-1)
        if L > m:
            return x[..., :m]
        return x

    for out, x in ((out_pad, x_pad), (out_trunc, x_trunc),
                   (out_eq, x_eq), (out_bf16, x_bf16)):
        assert out.shape == x.shape[:-1] + (max_len,)
        assert out.dtype == x.dtype
        assert bool(jnp.array_equal(out, ref(x, max_len)))

    print("KERNEL_OK")
</pallas_src>

<mosaic_0001>
module attributes {stable_mosaic.version = 11 : i64} {
  func.func @_pad_trunc_kernel(%arg0: i32, %arg1: i32, %arg2: memref<8x512xf32, #tpu.memory_space<vmem>>, %arg3: memref<8x512xf32, #tpu.memory_space<vmem>>) attributes {dimension_semantics = [#tpu.dimension_semantics<parallel>, #tpu.dimension_semantics<parallel>], iteration_bounds = array<i64: 1, 1>, scalar_prefetch = 0 : i64, scratch_operands = 0 : i64, tpu.core_type = #tpu.core_type<tc>, window_params = [{transform_indices = @transform_0, window_bounds = array<i64: 8, 512>}, {transform_indices = @transform_1, window_bounds = array<i64: 8, 512>}]} {
    %c0_i32 = arith.constant 0 : i32
    %0 = arith.cmpi slt, %arg1, %c0_i32 : i32
    %1 = arith.extui %0 : i1 to i32
    %c0_i32_0 = arith.constant 0 : i32
    %2 = arith.cmpi ne, %1, %c0_i32_0 : i32
    scf.if %2 {
      %c0 = arith.constant 0 : index
      %c0_4 = arith.constant 0 : index
      %9 = vector.load %arg2[%c0, %c0_4] : memref<8x512xf32, #tpu.memory_space<vmem>>, vector<8x512xf32>
      %c0_5 = arith.constant 0 : index
      %c0_6 = arith.constant 0 : index
      %10 = vector.load %arg3[%c0_5, %c0_6] : memref<8x512xf32, #tpu.memory_space<vmem>>, vector<8x512xf32>
      tpu.vector_store %arg3[%c0_5, %c0_6], %9 {strides = array<i32>} : memref<8x512xf32, #tpu.memory_space<vmem>>, vector<8x512xf32>,
    } else {
    }
    %c0_i32_1 = arith.constant 0 : i32
    %3 = arith.cmpi eq, %arg1, %c0_i32_1 : i32
    %4 = arith.extui %3 : i1 to i32
    %c0_i32_2 = arith.constant 0 : i32
    %5 = arith.cmpi ne, %4, %c0_i32_2 : i32
    scf.if %5 {
      %c0 = arith.constant 0 : index
      %c0_4 = arith.constant 0 : index
      %9 = vector.load %arg2[%c0, %c0_4] : memref<8x512xf32, #tpu.memory_space<vmem>>, vector<8x512xf32>
      %10 = tpu.iota {dimensions = array<i32: 1>} : vector<8x512xi32>
      %c300_i32 = arith.constant 300 : i32
      %11 = vector.broadcast %c300_i32 : i32 to vector<8x512xi32>
      %12 = arith.cmpi slt, %10, %11 : vector<8x512xi32>
      %cst = arith.constant 0.000000e+00 : f32
      %13 = vector.broadcast %cst : f32 to vector<8x512xf32>
      %14 = arith.select %12, %9, %13 : vector<8x512xi1>, vector<8x512xf32>
      %c0_5 = arith.constant 0 : index
      %c0_6 = arith.constant 0 : index
      %15 = vector.load %arg3[%c0_5, %c0_6] : memref<8x512xf32, #tpu.memory_space<vmem>>, vector<8x512xf32>
      tpu.vector_store %arg3[%c0_5, %c0_6], %14 {strides = array<i32>} : memref<8x512xf32, #tpu.memory_space<vmem>>, vector<8x512xf32>,
    } else {
    }
    %c1_i32 = arith.constant 1 : i32
    %6 = arith.cmpi sge, %arg1, %c1_i32 : i32
    %7 = arith.extui %6 : i1 to i32
    %c0_i32_3 = arith.constant 0 : i32
    %8 = arith.cmpi ne, %7, %c0_i32_3 : i32
    scf.if %8 {
      %cst = arith.constant 0.000000e+00 : f32
      %9 = vector.broadcast %cst : f32 to vector<8x512xf32>
      %c0 = arith.constant 0 : index
      %c0_4 = arith.constant 0 : index
      %10 = vector.load %arg3[%c0, %c0_4] : memref<8x512xf32, #tpu.memory_space<vmem>>, vector<8x512xf32>
      tpu.vector_store %arg3[%c0, %c0_4], %9 {strides = array<i32>} : memref<8x512xf32, #tpu.memory_space<vmem>>, vector<8x512xf32>,
    } else {
    }
    return
  }
  func.func @transform_0(%arg0: i32, %arg1: i32) -> (i32, i32) {
    %c0_i32 = arith.constant 0 : i32
    %0 = arith.minsi %arg1, %c0_i32 : i32
    %c0_i32_0 = arith.constant 0 : i32
    return %arg0, %0 : i32, i32
  }
  func.func @transform_1(%arg0: i32, %arg1: i32) -> (i32, i32) {
    %c0_i32 = arith.constant 0 : i32
    return %arg0, %arg1 : i32, i32
  }
}

</mosaic_0001>

<bundles_post_ra>
// kernel: tpu_custom_call.1
= control target key start
LH: loop header
LB: loop body
LE: loop exit
PB: predicated region body
PF: predicated region fallthrough
CT: control target
= control target key end

     0   :  { %6 = vsyncpa [#allocation3], 0  ;;  %s258_s0 = inlined_call_operand.hbm [shape: f32[2,300], index: 0, kind: input, shape index: {}]   ;;  %s259_s1 = inlined_call_operand.hbm [shape: f32[2,512], index: 1, kind: output, shape index: {}]  }
   0x1   :  { %7 = vsyncpa [#allocation4], 0 }
   0x2   :  { %12 = vsyncadd [#allocation3], 416  ;;  %s231_s6 = smov [#allocation2]  }
   0x3   :  { %s13_s7 = sshll.u32 %s231_s6, 4  ;;  %s14_s7 = int_to_ptr.vmem [resolvable:$true] %s13_s7 }
   0x4   :  { %s195_s8 = scalar_lea.vmem %s14_s7, 96  ;;  %s199_s9 = scalar_lea.vmem %s14_s7, 512 }
   0x5   :  { %p196_p0 = scmp.ne.s32.totalorder %s14_s7, %s195_s8  ;;  %p200_p1 = scmp.lt.s32.totalorder %s14_s7, %s14_s7 }
   0x6   :  { %p201_p2 = scmp.lt.s32.totalorder %s199_s9, %s195_s8 }
   0x8   :  { %p202_p3 = por %p201_p2, %p200_p1 }
   0xa   :  { %p203_p4 = pnand %p202_p3, %p196_p0 }
   0xc   :  { %206 = shalt.err (!%p203_p4)
}
   0xd   :  { %s232_s10 = smov 96   ;;  %s233_s11 = smov 128  }
   0xe   :  { %s234_s12 = smov 6  }
   0xf   :  { %19 = dma.hbm_to_vmem [thread:$0]  %s258_s0, 96, %s14_s7, [#allocation3], %s232_s10, %s233_s11, %s234_s12  }
  0x10   :  { %227 = dma.done.wait [#allocation3], 512  }
  0x11   :  { %228 = vsyncadd [#allocation3], 4294966784  ;;  %v43_v0 = vlaneseq  ;;  %v235_v1 = vmov 1983009808   ;;  %v181_v8 = vld [vmem:[#allocation2] ss:$8 sps:$4 sm:$0xff]  }
  0x12   :  { %v61_v2 = vunpack.c.l.s4 %v235_v1  ;;  %v183_v9 = vld [vmem:[#allocation2 + $0x4] ss:$8 sps:$4 sm:$0xff]   ;;  %v184_v10 = vld [vmem:[#allocation2 + $0x14] ss:$8 sps:$4 sm:$0xff]   ;;  %v186_v11 = vld [vmem:[#allocation2 + $0x10] ss:$8 sps:$4 sm:$0xff]  }
  0x13   :  { %v64_v3 = vshrl.u32 %v43_v0, 7  ;;  %v44_v5 = vand.u32 127, %v43_v0  ;;  %v236_v18 = vmov 0.0  }
  0x14   :  { %v62_v4 = vunpack.c.0.s8 %v61_v2 }
  0x15   :  { %v46_v7 = vadd.s32 256, %v44_v5 }
  0x16   :  { %v65_v6 = vsub.s32 %v62_v4, %v64_v3 }
  0x17   :  { %vm50_vm0 = vcmp.lt.s32.totalorder %v46_v7, 300 }
  0x18   :  { %v73_v12 = vrot.slane %v183_v9, %v65_v6  ;;  %v87_v13 = vrot.slane %v184_v10, %v65_v6  ;;  %v66_v14 = vrot.slane %v181_v8, %v65_v6  ;;  %v80_v15 = vrot.slane %v186_v11, %v65_v6 }
  0x1a   :  { %v90_v16 = vcombine.low %v73_v12, %v87_v13  ;;  %v114_v20 = vrot.slane %v66_v14, %v65_v6  ;;  %v121_v22 = vrot.slane %v80_v15, %v65_v6 }
  0x1c   :  { %v98_v17 = vsel %vm50_vm0, %v90_v16, 0.0 }
  0x1d   :  { %v106_v19 = vcombine.low %v98_v17, %v236_v18  ;;  %v107_v21 = vcombine.high %v98_v17, %v236_v18 }
  0x1f   :  { %v128_v23 = vrot.slane %v106_v19, %v65_v6  ;;  %v135_v24 = vrot.slane %v107_v21, %v65_v6 }
  0x21   :  { %v136_v25 = vcombine.low %v114_v20, %v128_v23  ;;  %v137_v26 = vcombine.high %v114_v20, %v128_v23  ;;  %v138_v27 = vcombine.low %v121_v22, %v135_v24  ;;  %v139_v28 = vcombine.high %v121_v22, %v135_v24 }
  0x23   :  { %144 = vst [vmem:[#allocation5] sm:$0xff] %v136_v25  ;;  %145 = vst [vmem:[#allocation5 + $0x8] sm:$0xff] %v137_v26 }
  0x24   :  { %146 = vst [vmem:[#allocation5 + $0x10] sm:$0xff] %v138_v27  ;;  %147 = vst [vmem:[#allocation5 + $0x18] sm:$0xff] %v139_v28 }
  0x25   :  { %160 = vsyncadd [#allocation4], 384  ;;  %s237_s0 = smov [#allocation5]  }
  0x26   :  { %s161_s15 = sshll.u32 %s237_s0, 4  ;;  %s162_s15 = int_to_ptr.vmem [resolvable:$true] %s161_s15 }
  0x27   :  { %s207_s16 = scalar_lea.vmem %s162_s15, 128  ;;  %s211_s17 = scalar_lea.vmem %s162_s15, 512 }
  0x28   :  { %p208_p5 = scmp.ne.s32.totalorder %s162_s15, %s207_s16  ;;  %p212_p6 = scmp.lt.s32.totalorder %s162_s15, %s162_s15 }
  0x29   :  { %p213_p7 = scmp.lt.s32.totalorder %s211_s17, %s207_s16 }
  0x2b   :  { %p214_p8 = por %p213_p7, %p212_p6 }
  0x2d   :  { %p215_p9 = pnand %p214_p8, %p208_p5 }
  0x2f   :  { %218 = shalt.err (!%p215_p9)
}
  0x30   :  { %s238_s18 = smov 8  }
  0x31   :  { %167 = dma.vmem_to_hbm [thread:$0]  %s162_s15, 128, %s259_s1, [#allocation4], %s233_s11, %s233_s11, %s238_s18  }
  0x32   :  { %229 = dma.done.wait [#allocation4], 512  }
  0x33   :  { %230 = vsyncadd [#allocation4], 4294966784 }
  0x34   :  { %171 = vsyncpa [#allocation3], 1 }
  0x35   :  { %172 = vsyncpa [#allocation4], 1 }

</bundles_post_ra>
